<compile_context>
chip_gen: v6e
topology: v6e:2x2x1
jax: 0.10.0
libtpu: 0.0.40
codegen_flags: <defaults>
</compile_context>

<pallas_src>
import functools

import jax
import jax.numpy as jnp
from jax.experimental import pallas as pl
from jax.experimental.pallas import tpu as pltpu


# ----------------------------------------------------------------------------
# helpers
# ----------------------------------------------------------------------------
def _round_up(n, m):
    return ((n + m - 1) // m) * m


def _pad2(a, rows, cols):
    return jnp.pad(a, ((0, rows - a.shape[0]), (0, cols - a.shape[1])))


# ----------------------------------------------------------------------------
# Pallas kernel: one LFLF_SAGE layer
#   grid = (Nt_pad // tile_nt, Ns_pad // tile_ns), axes = (parallel, arbitrary)
# ----------------------------------------------------------------------------
def _lflf_layer_kernel(is_last, tile_nt,
                       A_x_ref, x_ref, xt_ref,
                       A_y_ref, y_ref, yt_ref,
                       Wlr_x_ref, blx_ref,
                       Wlr_y_ref, bly_ref,
                       Wa1T_ref, ba1_ref, wa2_ref,
                       WmT_ref, bm_ref,
                       x_out_ref, y_out_ref,
                       acc_x_ref, acc_y_ref):
    f32 = jnp.float32
    k = pl.program_id(1)

    # ---- init accumulators at the start of each Ns sweep ----
    @pl.when(k == 0)
    def _():
        acc_x_ref[...] = jnp.zeros_like(acc_x_ref)
        acc_y_ref[...] = jnp.zeros_like(acc_y_ref)

    # ---- streamed aggregation: row-normalized adjacency @ features (bf16 MXU,
    #      f32 accumulation) ----
    acc_x_ref[...] += jnp.dot(A_x_ref[...], x_ref[...], preferred_element_type=f32)
    acc_y_ref[...] += jnp.dot(A_y_ref[...], y_ref[...], preferred_element_type=f32)

    # ---- epilogue on the last Ns block ----
    @pl.when(k == pl.num_programs(1) - 1)
    def _():
        # fused lin_l / lin_r:  [agg | x_target] @ [Wl^T ; Wr^T] + bl
        cat_x = jnp.concatenate([acc_x_ref[...], xt_ref[...]], axis=-1)
        emb_adj = (jnp.dot(cat_x, Wlr_x_ref[...], preferred_element_type=f32)
                   + blx_ref[...])
        cat_y = jnp.concatenate([acc_y_ref[...], yt_ref[...]], axis=-1)
        emb_lab = (jnp.dot(cat_y, Wlr_y_ref[...], preferred_element_type=f32)
                   + bly_ref[...])

        # fused attention scoring over both stacked views (one matmul + tanh)
        stacked = jnp.concatenate([emb_adj, emb_lab], axis=0)        # [2*Tnt, H]
        h = jnp.tanh(jnp.dot(stacked, Wa1T_ref[...], preferred_element_type=f32)
                     + ba1_ref[...])
        s = jnp.sum(h * wa2_ref[...], axis=-1, keepdims=True)        # [2*Tnt, 1]
        s_adj = s[:tile_nt]
        s_lab = s[tile_nt:]

        # softmax over the two views
        m = jnp.maximum(s_adj, s_lab)
        e_a = jnp.exp(s_adj - m)
        e_l = jnp.exp(s_lab - m)
        inv = pl.reciprocal(e_a + e_l, approx=True)
        x_new = (e_a * inv) * emb_adj + (e_l * inv) * emb_lab        # [Tnt, H]

        if not is_last:
            x_new = jnp.maximum(x_new, 0.0)                          # relu
            # TODO(synk): dropout skipped (eval mode -> identity)

        # mlp + sigmoid
        y_new = jax.nn.sigmoid(
            jnp.dot(x_new, WmT_ref[...], preferred_element_type=f32) + bm_ref[...])

        x_out_ref[...] = x_new.astype(x_out_ref.dtype)
        y_out_ref[...] = y_new.astype(y_out_ref.dtype)


def lflf_layer(is_last, A_x, x, xt, A_y, y, yt, p, tile_nt, tile_ns):
    """One LFLF_SAGE layer. A_x/A_y: [Nt_pad, Ns_pad] bf16; x/y: [Ns_pad, F] bf16;
    xt/yt: [Nt_pad, F] f32; p: packed/padded weights (lane-padded to 128)."""
    nt_p, ns_p = A_x.shape
    fin_p = x.shape[1]
    c_p = y.shape[1]
    h_p = p["Wlr_x"].shape[1]
    grid = (nt_p // tile_nt, ns_p // tile_ns)

    def full_spec(arr):
        return pl.BlockSpec(arr.shape, lambda i, k: (0, 0))

    in_specs = [
        pl.BlockSpec((tile_nt, tile_ns), lambda i, k: (i, k)),   # A_x
        pl.BlockSpec((tile_ns, fin_p), lambda i, k: (k, 0)),     # x (source)
        pl.BlockSpec((tile_nt, fin_p), lambda i, k: (i, 0)),     # x_target
        pl.BlockSpec((tile_nt, tile_ns), lambda i, k: (i, k)),   # A_y
        pl.BlockSpec((tile_ns, c_p), lambda i, k: (k, 0)),       # y (source)
        pl.BlockSpec((tile_nt, c_p), lambda i, k: (i, 0)),       # y_target
        full_spec(p["Wlr_x"]), full_spec(p["blx"]),
        full_spec(p["Wlr_y"]), full_spec(p["bly"]),
        full_spec(p["Wa1T"]), full_spec(p["ba1"]), full_spec(p["wa2"]),
        full_spec(p["WmT"]), full_spec(p["bm"]),
    ]
    out_specs = (
        pl.BlockSpec((tile_nt, h_p), lambda i, k: (i, 0)),
        pl.BlockSpec((tile_nt, c_p), lambda i, k: (i, 0)),
    )

    kernel = functools.partial(_lflf_layer_kernel, is_last, tile_nt)

    return pl.pallas_call(
        kernel,
        out_shape=(jax.ShapeDtypeStruct((nt_p, h_p), jnp.float32),
                   jax.ShapeDtypeStruct((nt_p, c_p), jnp.float32)),
        grid_spec=pltpu.PrefetchScalarGridSpec(
            num_scalar_prefetch=0,
            grid=grid,
            in_specs=in_specs,
            out_specs=out_specs,
            scratch_shapes=[pltpu.VMEM((tile_nt, fin_p), jnp.float32),
                            pltpu.VMEM((tile_nt, c_p), jnp.float32)]),
        compiler_params=pltpu.CompilerParams(
            dimension_semantics=("parallel", "arbitrary")),
    )(A_x, x, xt, A_y, y, yt,
      p["Wlr_x"], p["blx"], p["Wlr_y"], p["bly"],
      p["Wa1T"], p["ba1"], p["wa2"], p["WmT"], p["bm"])


# ----------------------------------------------------------------------------
# JAX glue: dense normalized adjacency + parameter init/packing + forward loop
# ----------------------------------------------------------------------------
def build_dense_adj(edge_index, edge_weight, ns, nt, ns_pad, nt_pad):
    """A[t, s] = sum_e(w_e) over edges s->t, divided by in-degree of t
    (reproduces message(x_j * w) followed by 'mean' aggregation).  bf16 output.
    TODO(synk): at large scale replace by scalar-prefetch gather aggregation."""
    src, dst = edge_index[0], edge_index[1]
    if edge_weight is None:
        edge_weight = jnp.ones(src.shape, jnp.float32)
    A = jnp.zeros((nt_pad, ns_pad), jnp.float32).at[dst, src].add(edge_weight)
    deg = jnp.zeros((nt_pad,), jnp.float32).at[dst].add(1.0)
    deg = jnp.where(deg == 0.0, 1.0, deg)
    return (A / deg[:, None]).astype(jnp.bfloat16)


def init_params(key, in_channels, hidden, class_ch, num_layers, att_hidden=16):
    ks = iter(jax.random.split(key, 64))

    def lin(kk, out_d, in_d, scale=0.1):
        return scale * jax.random.normal(kk, (out_d, in_d), jnp.float32)

    params = {"convs": []}
    for i in range(num_layers):
        cin = in_channels if i == 0 else hidden
        params["convs"].append({
            "Wl": lin(next(ks), hidden, cin),
            "bl": 0.1 * jax.random.normal(next(ks), (hidden,), jnp.float32),
            "Wr": lin(next(ks), hidden, cin),
        })
    params["label_conv"] = {
        "Wl": lin(next(ks), hidden, class_ch),
        "bl": 0.1 * jax.random.normal(next(ks), (hidden,), jnp.float32),
        "Wr": lin(next(ks), hidden, class_ch),
    }
    params["att"] = {
        "W1": lin(next(ks), att_hidden, hidden),
        "b1": 0.1 * jax.random.normal(next(ks), (att_hidden,), jnp.float32),
        "w2": lin(next(ks), 1, att_hidden),
    }
    params["mlp"] = {
        "W": lin(next(ks), class_ch, hidden),
        "b": 0.1 * jax.random.normal(next(ks), (class_ch,), jnp.float32),
    }
    return params


def layer_param_pack(params, layer_idx, lane=128):
    """Transpose, lane-pad (zeros) and fuse per-layer weights for the kernel."""
    conv = params["convs"][layer_idx]
    lab = params["label_conv"]
    att = params["att"]
    mlp = params["mlp"]

    hidden = mlp["W"].shape[1]
    class_ch = mlp["W"].shape[0]
    cin = conv["Wl"].shape[1]
    att_h = att["W1"].shape[0]

    h_p = _round_up(hidden, lane)
    c_p = _round_up(class_ch, lane)
    cin_p = _round_up(cin, lane)
    ha_p = _round_up(att_h, lane)

    def pad_t(W, rows, cols):            # W: [out, in] -> padded W^T [rows, cols]
        return _pad2(W.T.astype(jnp.float32), rows, cols)

    def pad_b(b, cols):
        return jnp.pad(b.astype(jnp.float32), (0, cols - b.shape[0]))[None, :]

    Wlr_x = jnp.concatenate([pad_t(conv["Wl"], cin_p, h_p),
                             pad_t(conv["Wr"], cin_p, h_p)], axis=0)
    Wlr_y = jnp.concatenate([pad_t(lab["Wl"], c_p, h_p),
                             pad_t(lab["Wr"], c_p, h_p)], axis=0)
    return {
        "Wlr_x": Wlr_x, "blx": pad_b(conv["bl"], h_p),
        "Wlr_y": Wlr_y, "bly": pad_b(lab["bl"], h_p),
        "Wa1T": pad_t(att["W1"], h_p, ha_p), "ba1": pad_b(att["b1"], ha_p),
        "wa2": _pad2(att["w2"].astype(jnp.float32), 1, ha_p),
        "WmT": pad_t(mlp["W"], h_p, c_p), "bm": pad_b(mlp["b"], c_p),
    }


def lflf_sage_forward(x, y, adjs, edge_weights, params, num_layers,
                      tile_nt=256, tile_ns=512, lane=128):
    """LFLF_SAGE.forward.  tile_nt/tile_ns default to v7x-safe sizes; on v6e
    with 128 MiB VMEM larger tiles (512/1024+) amortize more per-step overhead."""
    hidden = params["mlp"]["W"].shape[1]
    class_ch = params["mlp"]["W"].shape[0]
    c_p = _round_up(class_ch, lane)

    # lane-pad the initial node features / labels (zeros; padded weight rows are
    # zero so results are unchanged).
    x = _pad2(x.astype(jnp.float32), x.shape[0], _round_up(x.shape[1], lane))
    y = _pad2(y.astype(jnp.float32), y.shape[0], c_p)

    packed = [layer_param_pack(params, i, lane) for i in range(num_layers)]

    for i, (edge_index, _e_id, size) in enumerate(adjs):
        ns, nt = size
        tnt = min(tile_nt, _round_up(nt, 8))
        tns = min(tile_ns, _round_up(ns, 128))
        nt_p = _round_up(nt, tnt)
        ns_p = _round_up(ns, tns)

        A_x = build_dense_adj(edge_index, None, ns, nt, ns_p, nt_p)
        A_y = build_dense_adj(edge_index, edge_weights[i], ns, nt, ns_p, nt_p)

        x_src = _pad2(x, ns_p, x.shape[1]).astype(jnp.bfloat16)
        y_src = _pad2(y, ns_p, y.shape[1]).astype(jnp.bfloat16)
        xt = _pad2(x[:nt], nt_p, x.shape[1])
        yt = _pad2(y[:nt], nt_p, y.shape[1])

        x_new, y_new = lflf_layer(i == num_layers - 1,
                                  A_x, x_src, xt, A_y, y_src, yt,
                                  packed[i], tnt, tns)
        x = x_new[:nt]
        y = y_new[:nt]

    return x[:, :hidden], y[:, :class_ch]


# ----------------------------------------------------------------------------
# Example
# ----------------------------------------------------------------------------
if __name__ == "__main__":
    key = jax.random.PRNGKey(0)
    k_x, k_y, k_e0, k_e1, k_w0, k_w1, k_p = jax.random.split(key, 7)

    IN_CH, HIDDEN, CLASS_CH, NUM_LAYERS, DROPOUT = 8, 32, 4, 2, 0.5

    # layer 0: 24 source nodes -> 16 target nodes
    # layer 1: 16 source nodes -> 8 target nodes
    sizes = [(24, 16), (16, 8)]

    x0 = jax.random.normal(k_x, (sizes[0][0], IN_CH), jnp.float32)
    y0 = jax.nn.sigmoid(jax.random.normal(k_y, (sizes[0][0], CLASS_CH), jnp.float32))

    def make_edges(kk, ns, nt, n_rand):
        k_s, k_t = jax.random.split(kk)
        src = jax.random.randint(k_s, (n_rand,), 0, ns)
        dst = jax.random.randint(k_t, (n_rand,), 0, nt)
        # self-loops so every target has at least one incoming edge
        loops = jnp.arange(nt)
        src = jnp.concatenate([src, loops])
        dst = jnp.concatenate([dst, loops])
        return jnp.stack([src, dst], axis=0)

    ei0 = make_edges(k_e0, *sizes[0], 48)
    ei1 = make_edges(k_e1, *sizes[1], 24)
    adjs = [(ei0, None, sizes[0]), (ei1, None, sizes[1])]

    edge_weights = [
        jax.random.uniform(k_w0, (ei0.shape[1],), jnp.float32),
        jax.random.uniform(k_w1, (ei1.shape[1],), jnp.float32),
    ]

    params = init_params(k_p, IN_CH, HIDDEN, CLASS_CH, NUM_LAYERS)

    x_out, y_out = lflf_sage_forward(x0, y0, adjs, edge_weights, params, NUM_LAYERS)
    jax.block_until_ready((x_out, y_out))

    assert x_out.shape == (sizes[-1][1], HIDDEN)
    assert y_out.shape == (sizes[-1][1], CLASS_CH)
    assert bool(jnp.all(jnp.isfinite(x_out))) and bool(jnp.all(jnp.isfinite(y_out)))
    print("KERNEL_OK")
</pallas_src>

<mosaic_0001>
module attributes {stable_mosaic.version = 11 : i64} {
  func.func @_lflf_layer_kernel(%arg0: i32, %arg1: i32, %arg2: memref<16x128xbf16, #tpu.memory_space<vmem>>, %arg3: memref<128x128xbf16, #tpu.memory_space<vmem>>, %arg4: memref<16x128xf32, #tpu.memory_space<vmem>>, %arg5: memref<16x128xbf16, #tpu.memory_space<vmem>>, %arg6: memref<128x128xbf16, #tpu.memory_space<vmem>>, %arg7: memref<16x128xf32, #tpu.memory_space<vmem>>, %arg8: memref<256x128xf32, #tpu.memory_space<vmem>>, %arg9: memref<1x128xf32, #tpu.memory_space<vmem>>, %arg10: memref<256x128xf32, #tpu.memory_space<vmem>>, %arg11: memref<1x128xf32, #tpu.memory_space<vmem>>, %arg12: memref<128x128xf32, #tpu.memory_space<vmem>>, %arg13: memref<1x128xf32, #tpu.memory_space<vmem>>, %arg14: memref<1x128xf32, #tpu.memory_space<vmem>>, %arg15: memref<128x128xf32, #tpu.memory_space<vmem>>, %arg16: memref<1x128xf32, #tpu.memory_space<vmem>>, %arg17: memref<16x128xf32, #tpu.memory_space<vmem>>, %arg18: memref<16x128xf32, #tpu.memory_space<vmem>>, %arg19: memref<16x128xf32, #tpu.memory_space<vmem>>, %arg20: memref<16x128xf32, #tpu.memory_space<vmem>>) attributes {dimension_semantics = [#tpu.dimension_semantics<parallel>, #tpu.dimension_semantics<arbitrary>], iteration_bounds = array<i64: 1, 1>, scalar_prefetch = 0 : i64, scratch_operands = 2 : i64, tpu.core_type = #tpu.core_type<tc>, window_params = [{transform_indices = @transform_0, window_bounds = array<i64: 16, 128>}, {transform_indices = @transform_1, window_bounds = array<i64: 128, 128>}, {transform_indices = @transform_2, window_bounds = array<i64: 16, 128>}, {transform_indices = @transform_3, window_bounds = array<i64: 16, 128>}, {transform_indices = @transform_4, window_bounds = array<i64: 128, 128>}, {transform_indices = @transform_5, window_bounds = array<i64: 16, 128>}, {pipeline_mode = #tpu.pipeline_mode<synchronous>, transform_indices = @transform_6, window_bounds = array<i64: 256, 128>}, {pipeline_mode = #tpu.pipeline_mode<synchronous>, transform_indices = @transform_7, window_bounds = array<i64: 1, 128>}, {pipeline_mode = #tpu.pipeline_mode<synchronous>, transform_indices = @transform_8, window_bounds = array<i64: 256, 128>}, {pipeline_mode = #tpu.pipeline_mode<synchronous>, transform_indices = @transform_9, window_bounds = array<i64: 1, 128>}, {pipeline_mode = #tpu.pipeline_mode<synchronous>, transform_indices = @transform_10, window_bounds = array<i64: 128, 128>}, {pipeline_mode = #tpu.pipeline_mode<synchronous>, transform_indices = @transform_11, window_bounds = array<i64: 1, 128>}, {pipeline_mode = #tpu.pipeline_mode<synchronous>, transform_indices = @transform_12, window_bounds = array<i64: 1, 128>}, {pipeline_mode = #tpu.pipeline_mode<synchronous>, transform_indices = @transform_13, window_bounds = array<i64: 128, 128>}, {pipeline_mode = #tpu.pipeline_mode<synchronous>, transform_indices = @transform_14, window_bounds = array<i64: 1, 128>}, {transform_indices = @transform_15, window_bounds = array<i64: 16, 128>}, {transform_indices = @transform_16, window_bounds = array<i64: 16, 128>}]} {
    %c0_i32 = arith.constant 0 : i32
    %0 = arith.cmpi eq, %arg1, %c0_i32 : i32
    %1 = arith.extui %0 : i1 to i32
    %c0_i32_0 = arith.constant 0 : i32
    %2 = arith.cmpi ne, %1, %c0_i32_0 : i32
    scf.if %2 {
      %cst_19 = arith.constant 0.000000e+00 : f32
      %18 = vector.broadcast %cst_19 : f32 to vector<16x128xf32>
      %c0_20 = arith.constant 0 : index
      %c0_21 = arith.constant 0 : index
      %19 = vector.load %arg19[%c0_20, %c0_21] : memref<16x128xf32, #tpu.memory_space<vmem>>, vector<16x128xf32>
      tpu.vector_store %arg19[%c0_20, %c0_21], %18 {strides = array<i32>} : memref<16x128xf32, #tpu.memory_space<vmem>>, vector<16x128xf32>,
      %cst_22 = arith.constant 0.000000e+00 : f32
      %20 = vector.broadcast %cst_22 : f32 to vector<16x128xf32>
      %c0_23 = arith.constant 0 : index
      %c0_24 = arith.constant 0 : index
      %21 = vector.load %arg20[%c0_23, %c0_24] : memref<16x128xf32, #tpu.memory_space<vmem>>, vector<16x128xf32>
      tpu.vector_store %arg20[%c0_23, %c0_24], %20 {strides = array<i32>} : memref<16x128xf32, #tpu.memory_space<vmem>>, vector<16x128xf32>,
    } else {
    }
    %c0 = arith.constant 0 : index
    %c0_1 = arith.constant 0 : index
    %3 = vector.load %arg19[%c0, %c0_1] : memref<16x128xf32, #tpu.memory_space<vmem>>, vector<16x128xf32>
    %c0_2 = arith.constant 0 : index
    %c0_3 = arith.constant 0 : index
    %4 = vector.load %arg2[%c0_2, %c0_3] : memref<16x128xbf16, #tpu.memory_space<vmem>>, vector<16x128xbf16>
    %c0_4 = arith.constant 0 : index
    %c0_5 = arith.constant 0 : index
    %5 = vector.load %arg3[%c0_4, %c0_5] : memref<128x128xbf16, #tpu.memory_space<vmem>>, vector<128x128xbf16>
    %cst = arith.constant dense<0.000000e+00> : vector<16x128xf32>
    %6 = tpu.matmul %4, %5, %cst {dimension_numbers = #tpu.dot_dimension_numbers<[1], [0], [0], [1], [0, 0, 1, 1], [], []>} : vector<16x128xbf16>, vector<128x128xbf16>, vector<16x128xf32> -> vector<16x128xf32>
    %7 = arith.addf %3, %6 : vector<16x128xf32>
    %c0_6 = arith.constant 0 : index
    %c0_7 = arith.constant 0 : index
    %8 = vector.load %arg19[%c0_6, %c0_7] : memref<16x128xf32, #tpu.memory_space<vmem>>, vector<16x128xf32>
    tpu.vector_store %arg19[%c0_6, %c0_7], %7 {strides = array<i32>} : memref<16x128xf32, #tpu.memory_space<vmem>>, vector<16x128xf32>,
    %c0_8 = arith.constant 0 : index
    %c0_9 = arith.constant 0 : index
    %9 = vector.load %arg20[%c0_8, %c0_9] : memref<16x128xf32, #tpu.memory_space<vmem>>, vector<16x128xf32>
    %c0_10 = arith.constant 0 : index
    %c0_11 = arith.constant 0 : index
    %10 = vector.load %arg5[%c0_10, %c0_11] : memref<16x128xbf16, #tpu.memory_space<vmem>>, vector<16x128xbf16>
    %c0_12 = arith.constant 0 : index
    %c0_13 = arith.constant 0 : index
    %11 = vector.load %arg6[%c0_12, %c0_13] : memref<128x128xbf16, #tpu.memory_space<vmem>>, vector<128x128xbf16>
    %cst_14 = arith.constant dense<0.000000e+00> : vector<16x128xf32>
    %12 = tpu.matmul %10, %11, %cst_14 {dimension_numbers = #tpu.dot_dimension_numbers<[1], [0], [0], [1], [0, 0, 1, 1], [], []>} : vector<16x128xbf16>, vector<128x128xbf16>, vector<16x128xf32> -> vector<16x128xf32>
    %13 = arith.addf %9, %12 : vector<16x128xf32>
    %c0_15 = arith.constant 0 : index
    %c0_16 = arith.constant 0 : index
    %14 = vector.load %arg20[%c0_15, %c0_16] : memref<16x128xf32, #tpu.memory_space<vmem>>, vector<16x128xf32>
    tpu.vector_store %arg20[%c0_15, %c0_16], %13 {strides = array<i32>} : memref<16x128xf32, #tpu.memory_space<vmem>>, vector<16x128xf32>,
    %c0_i32_17 = arith.constant 0 : i32
    %15 = arith.cmpi eq, %arg1, %c0_i32_17 : i32
    %16 = arith.extui %15 : i1 to i32
    %c0_i32_18 = arith.constant 0 : i32
    %17 = arith.cmpi ne, %16, %c0_i32_18 : i32
    scf.if %17 {
      %c0_19 = arith.constant 0 : index
      %c0_20 = arith.constant 0 : index
      %18 = vector.load %arg19[%c0_19, %c0_20] : memref<16x128xf32, #tpu.memory_space<vmem>>, vector<16x128xf32>
      %c0_21 = arith.constant 0 : index
      %c0_22 = arith.constant 0 : index
      %19 = vector.load %arg4[%c0_21, %c0_22] : memref<16x128xf32, #tpu.memory_space<vmem>>, vector<16x128xf32>
      %20 = tpu.concatenate %18, %19 in 1 : vector<16x128xf32>, vector<16x128xf32> -> vector<16x256xf32>
      %c0_23 = arith.constant 0 : index
      %c0_24 = arith.constant 0 : index
      %21 = vector.load %arg8[%c0_23, %c0_24] : memref<256x128xf32, #tpu.memory_space<vmem>>, vector<256x128xf32>
      %cst_25 = arith.constant dense<0.000000e+00> : vector<16x128xf32>
      %22 = tpu.matmul %20, %21, %cst_25 {dimension_numbers = #tpu.dot_dimension_numbers<[1], [0], [0], [1], [0, 0, 1, 1], [], []>} : vector<16x256xf32>, vector<256x128xf32>, vector<16x128xf32> -> vector<16x128xf32>
      %c0_26 = arith.constant 0 : index
      %c0_27 = arith.constant 0 : index
      %23 = vector.load %arg9[%c0_26, %c0_27] : memref<1x128xf32, #tpu.memory_space<vmem>>, vector<1x128xf32>
      %24 = vector.broadcast %23 : vector<1x128xf32> to vector<16x128xf32>
      %25 = arith.addf %22, %24 : vector<16x128xf32>
      %c0_28 = arith.constant 0 : index
      %c0_29 = arith.constant 0 : index
      %26 = vector.load %arg20[%c0_28, %c0_29] : memref<16x128xf32, #tpu.memory_space<vmem>>, vector<16x128xf32>
      %c0_30 = arith.constant 0 : index
      %c0_31 = arith.constant 0 : index
      %27 = vector.load %arg7[%c0_30, %c0_31] : memref<16x128xf32, #tpu.memory_space<vmem>>, vector<16x128xf32>
      %28 = tpu.concatenate %26, %27 in 1 : vector<16x128xf32>, vector<16x128xf32> -> vector<16x256xf32>
      %c0_32 = arith.constant 0 : index
      %c0_33 = arith.constant 0 : index
      %29 = vector.load %arg10[%c0_32, %c0_33] : memref<256x128xf32, #tpu.memory_space<vmem>>, vector<256x128xf32>
      %cst_34 = arith.constant dense<0.000000e+00> : vector<16x128xf32>
      %30 = tpu.matmul %28, %29, %cst_34 {dimension_numbers = #tpu.dot_dimension_numbers<[1], [0], [0], [1], [0, 0, 1, 1], [], []>} : vector<16x256xf32>, vector<256x128xf32>, vector<16x128xf32> -> vector<16x128xf32>
      %c0_35 = arith.constant 0 : index
      %c0_36 = arith.constant 0 : index
      %31 = vector.load %arg11[%c0_35, %c0_36] : memref<1x128xf32, #tpu.memory_space<vmem>>, vector<1x128xf32>
      %32 = vector.broadcast %31 : vector<1x128xf32> to vector<16x128xf32>
      %33 = arith.addf %30, %32 : vector<16x128xf32>
      %34 = tpu.concatenate %25, %33 in 0 : vector<16x128xf32>, vector<16x128xf32> -> vector<32x128xf32>
      %c0_37 = arith.constant 0 : index
      %c0_38 = arith.constant 0 : index
      %35 = vector.load %arg12[%c0_37, %c0_38] : memref<128x128xf32, #tpu.memory_space<vmem>>, vector<128x128xf32>
      %cst_39 = arith.constant dense<0.000000e+00> : vector<32x128xf32>
      %36 = tpu.matmul %34, %35, %cst_39 {dimension_numbers = #tpu.dot_dimension_numbers<[1], [0], [0], [1], [0, 0, 1, 1], [], []>} : vector<32x128xf32>, vector<128x128xf32>, vector<32x128xf32> -> vector<32x128xf32>
      %c0_40 = arith.constant 0 : index
      %c0_41 = arith.constant 0 : index
      %37 = vector.load %arg13[%c0_40, %c0_41] : memref<1x128xf32, #tpu.memory_space<vmem>>, vector<1x128xf32>
      %38 = vector.broadcast %37 : vector<1x128xf32> to vector<32x128xf32>
      %39 = arith.addf %36, %38 : vector<32x128xf32>
      %40 = math.tanh %39 : vector<32x128xf32>
      %c0_42 = arith.constant 0 : index
      %c0_43 = arith.constant 0 : index
      %41 = vector.load %arg14[%c0_42, %c0_43] : memref<1x128xf32, #tpu.memory_space<vmem>>, vector<1x128xf32>
      %42 = vector.broadcast %41 : vector<1x128xf32> to vector<32x128xf32>
      %43 = arith.mulf %40, %42 : vector<32x128xf32>
      %cst_44 = arith.constant dense<0.000000e+00> : vector<32xf32>
      %44 = vector.multi_reduction <add>, %43, %cst_44 [1] : vector<32x128xf32> to vector<32xf32>
      %45 = vector.shape_cast %44 : vector<32xf32> to vector<32x1xf32>
      %46 = vector.extract_strided_slice %45 {offsets = [0, 0], sizes = [16, 1], strides = [1, 1]} : vector<32x1xf32> to vector<16x1xf32>
      %47 = vector.extract_strided_slice %45 {offsets = [16, 0], sizes = [16, 1], strides = [1, 1]} : vector<32x1xf32> to vector<16x1xf32>
      %48 = arith.maximumf %46, %47 : vector<16x1xf32>
      %49 = arith.subf %46, %48 : vector<16x1xf32>
      %50 = math.exp %49 : vector<16x1xf32>
      %51 = arith.subf %47, %48 : vector<16x1xf32>
      %52 = math.exp %51 : vector<16x1xf32>
      %53 = arith.addf %50, %52 : vector<16x1xf32>
      %54 = tpu.reciprocal %53 {approx = true} : vector<16x1xf32> -> vector<16x1xf32>
      %55 = arith.mulf %50, %54 : vector<16x1xf32>
      %56 = vector.broadcast %55 : vector<16x1xf32> to vector<16x128xf32>
      %57 = arith.mulf %56, %25 : vector<16x128xf32>
      %58 = arith.mulf %52, %54 : vector<16x1xf32>
      %59 = vector.broadcast %58 : vector<16x1xf32> to vector<16x128xf32>
      %60 = arith.mulf %59, %33 : vector<16x128xf32>
      %61 = arith.addf %57, %60 : vector<16x128xf32>
      %cst_45 = arith.constant 0.000000e+00 : f32
      %62 = vector.broadcast %cst_45 : f32 to vector<16x128xf32>
      %63 = arith.maximumf %61, %62 : vector<16x128xf32>
      %c0_46 = arith.constant 0 : index
      %c0_47 = arith.constant 0 : index
      %64 = vector.load %arg15[%c0_46, %c0_47] : memref<128x128xf32, #tpu.memory_space<vmem>>, vector<128x128xf32>
      %cst_48 = arith.constant dense<0.000000e+00> : vector<16x128xf32>
      %65 = tpu.matmul %63, %64, %cst_48 {dimension_numbers = #tpu.dot_dimension_numbers<[1], [0], [0], [1], [0, 0, 1, 1], [], []>} : vector<16x128xf32>, vector<128x128xf32>, vector<16x128xf32> -> vector<16x128xf32>
      %c0_49 = arith.constant 0 : index
      %c0_50 = arith.constant 0 : index
      %66 = vector.load %arg16[%c0_49, %c0_50] : memref<1x128xf32, #tpu.memory_space<vmem>>, vector<1x128xf32>
      %67 = vector.broadcast %66 : vector<1x128xf32> to vector<16x128xf32>
      %68 = arith.addf %65, %67 : vector<16x128xf32>
      %69 = arith.negf %68 : vector<16x128xf32>
      %70 = math.exp %69 : vector<16x128xf32>
      %cst_51 = arith.constant 1.000000e+00 : f32
      %71 = vector.broadcast %cst_51 : f32 to vector<16x128xf32>
      %72 = arith.addf %71, %70 : vector<16x128xf32>
      %73 = arith.divf %71, %72 : vector<16x128xf32>
      %c0_52 = arith.constant 0 : index
      %c0_53 = arith.constant 0 : index
      %74 = vector.load %arg17[%c0_52, %c0_53] : memref<16x128xf32, #tpu.memory_space<vmem>>, vector<16x128xf32>
      tpu.vector_store %arg17[%c0_52, %c0_53], %63 {strides = array<i32>} : memref<16x128xf32, #tpu.memory_space<vmem>>, vector<16x128xf32>,
      %c0_54 = arith.constant 0 : index
      %c0_55 = arith.constant 0 : index
      %75 = vector.load %arg18[%c0_54, %c0_55] : memref<16x128xf32, #tpu.memory_space<vmem>>, vector<16x128xf32>
      tpu.vector_store %arg18[%c0_54, %c0_55], %73 {strides = array<i32>} : memref<16x128xf32, #tpu.memory_space<vmem>>, vector<16x128xf32>,
    } else {
    }
    return
  }
  func.func @transform_0(%arg0: i32, %arg1: i32) -> (i32, i32) {
    %c0_i32 = arith.constant 0 : i32
    return %arg0, %arg1 : i32, i32
  }
  func.func @transform_1(%arg0: i32, %arg1: i32) -> (i32, i32) {
    %c0_i32 = arith.constant 0 : i32
    %c0_i32_0 = arith.constant 0 : i32
    return %arg1, %c0_i32 : i32, i32
  }
  func.func @transform_2(%arg0: i32, %arg1: i32) -> (i32, i32) {
    %c0_i32 = arith.constant 0 : i32
    %c0_i32_0 = arith.constant 0 : i32
    return %arg0, %c0_i32 : i32, i32
  }
  func.func @transform_3(%arg0: i32, %arg1: i32) -> (i32, i32) {
    %c0_i32 = arith.constant 0 : i32
    return %arg0, %arg1 : i32, i32
  }
  func.func @transform_4(%arg0: i32, %arg1: i32) -> (i32, i32) {
    %c0_i32 = arith.constant 0 : i32
    %c0_i32_0 = arith.constant 0 : i32
    return %arg1, %c0_i32 : i32, i32
  }
  func.func @transform_5(%arg0: i32, %arg1: i32) -> (i32, i32) {
    %c0_i32 = arith.constant 0 : i32
    %c0_i32_0 = arith.constant 0 : i32
    return %arg0, %c0_i32 : i32, i32
  }
  func.func @transform_6(%arg0: i32, %arg1: i32) -> (i32, i32) {
    %c0_i32 = arith.constant 0 : i32
    %c0_i32_0 = arith.constant 0 : i32
    %c0_i32_1 = arith.constant 0 : i32
    return %c0_i32, %c0_i32_0 : i32, i32
  }
  func.func @transform_7(%arg0: i32, %arg1: i32) -> (i32, i32) {
    %c0_i32 = arith.constant 0 : i32
    %c0_i32_0 = arith.constant 0 : i32
    %c0_i32_1 = arith.constant 0 : i32
    return %c0_i32, %c0_i32_0 : i32, i32
  }
  func.func @transform_8(%arg0: i32, %arg1: i32) -> (i32, i32) {
    %c0_i32 = arith.constant 0 : i32
    %c0_i32_0 = arith.constant 0 : i32
    %c0_i32_1 = arith.constant 0 : i32
    return %c0_i32, %c0_i32_0 : i32, i32
  }
  func.func @transform_9(%arg0: i32, %arg1: i32) -> (i32, i32) {
    %c0_i32 = arith.constant 0 : i32
    %c0_i32_0 = arith.constant 0 : i32
    %c0_i32_1 = arith.constant 0 : i32
    return %c0_i32, %c0_i32_0 : i32, i32
  }
  func.func @transform_10(%arg0: i32, %arg1: i32) -> (i32, i32) {
    %c0_i32 = arith.constant 0 : i32
    %c0_i32_0 = arith.constant 0 : i32
    %c0_i32_1 = arith.constant 0 : i32
    return %c0_i32, %c0_i32_0 : i32, i32
  }
  func.func @transform_11(%arg0: i32, %arg1: i32) -> (i32, i32) {
    %c0_i32 = arith.constant 0 : i32
    %c0_i32_0 = arith.constant 0 : i32
    %c0_i32_1 = arith.constant 0 : i32
    return %c0_i32, %c0_i32_0 : i32, i32
  }
  func.func @transform_12(%arg0: i32, %arg1: i32) -> (i32, i32) {
    %c0_i32 = arith.constant 0 : i32
    %c0_i32_0 = arith.constant 0 : i32
    %c0_i32_1 = arith.constant 0 : i32
    return %c0_i32, %c0_i32_0 : i32, i32
  }
  func.func @transform_13(%arg0: i32, %arg1: i32) -> (i32, i32) {
    %c0_i32 = arith.constant 0 : i32
    %c0_i32_0 = arith.constant 0 : i32
    %c0_i32_1 = arith.constant 0 : i32
    return %c0_i32, %c0_i32_0 : i32, i32
  }
  func.func @transform_14(%arg0: i32, %arg1: i32) -> (i32, i32) {
    %c0_i32 = arith.constant 0 : i32
    %c0_i32_0 = arith.constant 0 : i32
    %c0_i32_1 = arith.constant 0 : i32
    return %c0_i32, %c0_i32_0 : i32, i32
  }
  func.func @transform_15(%arg0: i32, %arg1: i32) -> (i32, i32) {
    %c0_i32 = arith.constant 0 : i32
    %c0_i32_0 = arith.constant 0 : i32
    return %arg0, %c0_i32 : i32, i32
  }
  func.func @transform_16(%arg0: i32, %arg1: i32) -> (i32, i32) {
    %c0_i32 = arith.constant 0 : i32
    %c0_i32_0 = arith.constant 0 : i32
    return %arg0, %c0_i32 : i32, i32
  }
}

</mosaic_0001>

<bundles_post_ra>
// kernel: tpu_custom_call.1
= control target key start
LH: loop header
LB: loop body
LE: loop exit
PB: predicated region body
PF: predicated region fallthrough
CT: control target
= control target key end

     0   :  { %s1785_s0 = inlined_call_operand.hbm [shape: bf16[16,128], index: 0, kind: input, shape index: {}]   ;;  %s1786_s1 = inlined_call_operand.hbm [shape: bf16[128,128], index: 1, kind: input, shape index: {}]   ;;  %s1787_s2 = inlined_call_operand.hbm [shape: f32[16,128], index: 2, kind: input, shape index: {}]   ;;  %s1788_s3 = inlined_call_operand.hbm [shape: bf16[16,128], index: 3, kind: input, shape index: {}]   ;;  %s1789_s4 = inlined_call_operand.hbm [shape: bf16[128,128], index: 4, kind: input, shape index: {}]   ;;  %s1790_s5 = inlined_call_operand.hbm [shape: f32[16,128], index: 5, kind: input, shape index: {}]   ;;  %s1791_s6 = inlined_call_operand.hbm [shape: f32[256,128], index: 6, kind: input, shape index: {}]   ;;  %s1792_s7 = inlined_call_operand.vmem [shape: f32[1,128], index: 7, kind: input, shape index: {}]   ;;  %s1793_s8 = inlined_call_operand.hbm [shape: f32[256,128], index: 8, kind: input, shape index: {}]   ;;  %s1794_s9 = inlined_call_operand.vmem [shape: f32[1,128], index: 9, kind: input, shape index: {}]   ;;  %s1795_s10 = inlined_call_operand.hbm [shape: f32[128,128], index: 10, kind: input, shape index: {}]   ;;  %s1796_s11 = inlined_call_operand.vmem [shape: f32[1,128], index: 11, kind: input, shape index: {}]   ;;  %s1797_s12 = inlined_call_operand.vmem [shape: f32[1,128], index: 12, kind: input, shape index: {}]   ;;  %s1798_s13 = inlined_call_operand.hbm [shape: f32[128,128], index: 13, kind: input, shape index: {}]   ;;  %s1799_s14 = inlined_call_operand.vmem [shape: f32[1,128], index: 14, kind: input, shape index: {}]   ;;  %s1800_s15 = inlined_call_operand.hbm [shape: f32[16,128], index: 15, kind: output, shape index: {0}]   ;;  %s1801_s16 = inlined_call_operand.hbm [shape: f32[16,128], index: 16, kind: output, shape index: {1}]  }
   0x1   :  { %1802 = sst [smem:[#allocation32_spill]] %s1785_s0 }
   0x2   :  { %22 = vsyncpa [#allocation5], 0 }
   0x3   :  { %23 = vsyncpa [#allocation8], 0 }
   0x4   :  { %24 = vsyncpa [#allocation11], 0 }
   0x5   :  { %25 = vsyncpa [#allocation14], 0 }
   0x6   :  { %26 = vsyncpa [#allocation17], 0 }
   0x7   :  { %27 = vsyncpa [#allocation20], 0 }
   0x8   :  { %28 = vsyncpa [#allocation6], 0 }
   0x9   :  { %29 = vsyncpa [#allocation23], 0  ;;  %s1579_s21 = smov [#allocation7]   ;;  %s1580_s23 = smov [#allocation10]  }
   0xa   :  { %s47_s22 = sshll.u32 %s1579_s21, 4  ;;  %s71_s24 = sshll.u32 %s1580_s23, 4  ;;  %s48_s22 = int_to_ptr.vmem [resolvable:$true] %s47_s22  ;;  %s72_s24 = int_to_ptr.vmem [resolvable:$true] %s71_s24 }
   0xb   :  { %s1331_s25 = scalar_lea.vmem %s48_s22, 1024  ;;  %p1336_p1 = scmp.lt.s32.totalorder %s48_s22, %s48_s22 }
   0xc   :  { %p1332_p0 = scmp.ne.s32.totalorder %s48_s22, %s1331_s25  ;;  %p1337_p2 = scmp.lt.s32.totalorder %s1331_s25, %s1331_s25 }
   0xe   :  { %p1338_p3 = por %p1337_p2, %p1336_p1 }
  0x10   :  { %p1339_p4 = pnand %p1338_p3, %p1332_p0 }
  0x12   :  { %1342 = shalt.err (!%p1339_p4)
}
  0x13   :  { %s1581_s26 = smov 64   ;;  %s1582_s27 = smov 4  }
  0x14   :  { %53 = dma.hbm_to_vmem [thread:$0]  %s1786_s1, 1024, %s48_s22, [#allocation8], %s1581_s26, %s1581_s26, %s1582_s27  }
  0x15   :  { %s1351_s30 = scalar_lea.vmem %s72_s24, 128  ;;  %p1356_p6 = scmp.lt.s32.totalorder %s72_s24, %s72_s24 }
  0x16   :  { %p1352_p5 = scmp.ne.s32.totalorder %s72_s24, %s1351_s30  ;;  %p1357_p7 = scmp.lt.s32.totalorder %s1351_s30, %s1351_s30 }
  0x18   :  { %p1358_p8 = por %p1357_p7, %p1356_p6 }
  0x1a   :  { %p1359_p9 = pnand %p1358_p8, %p1352_p5 }
  0x1c   :  { %1362 = shalt.err (!%p1359_p9)
}
  0x1d   :  { %77 = dma.hbm_to_vmem [thread:$0]  %s1788_s3, 128, %s72_s24, [#allocation11], %s1581_s26, %s1581_s26, %s1582_s27  }
  0x1e   :  { %s1583_s18 = smov [#allocation13]   ;;  %s1584_s20 = smov [#allocation16]  }
  0x1f   :  { %s95_s19 = sshll.u32 %s1583_s18, 4  ;;  %s121_s21 = sshll.u32 %s1584_s20, 4  ;;  %s96_s19 = int_to_ptr.vmem [resolvable:$true] %s95_s19  ;;  %s122_s21 = int_to_ptr.vmem [resolvable:$true] %s121_s21 }
  0x20   :  { %s1371_s1 = scalar_lea.vmem %s96_s19, 256  ;;  %p1376_p11 = scmp.lt.s32.totalorder %s96_s19, %s96_s19 }
  0x21   :  { %p1372_p10 = scmp.ne.s32.totalorder %s96_s19, %s1371_s1  ;;  %p1377_p12 = scmp.lt.s32.totalorder %s1371_s1, %s1371_s1 }
  0x23   :  { %p1378_p13 = por %p1377_p12, %p1376_p11 }
  0x25   :  { %p1379_p0 = pnand %p1378_p13, %p1372_p10 }
  0x27   :  { %1382 = shalt.err (!%p1379_p0)
}
  0x28   :  { %s1585_s22 = smov 128   ;;  %s1586_s23 = smov 8  }
  0x29   :  { %101 = dma.hbm_to_vmem [thread:$0]  %s1790_s5, 256, %s96_s19, [#allocation14], %s1585_s22, %s1585_s22, %s1586_s23  }
  0x2a   :  { %s1391_s24 = scalar_lea.vmem %s122_s21, 4096  ;;  %p1396_p2 = scmp.lt.s32.totalorder %s122_s21, %s122_s21 }
  0x2b   :  { %p1392_p1 = scmp.ne.s32.totalorder %s122_s21, %s1391_s24  ;;  %p1397_p3 = scmp.lt.s32.totalorder %s1391_s24, %s1391_s24 }
  0x2d   :  { %p1398_p4 = por %p1397_p3, %p1396_p2 }
  0x2f   :  { %p1399_p5 = pnand %p1398_p4, %p1392_p1 }
  0x31   :  { %1402 = shalt.err (!%p1399_p5)
}
  0x32   :  { %127 = dma.hbm_to_vmem [thread:$0]  %s1793_s8, 4096, %s122_s21, [#allocation17], %s1585_s22, %s1585_s22, %s1586_s23  }
  0x33   :  { %s1587_s30 = smov [#allocation4]   ;;  %s1588_s17 = smov [#allocation9]  }
  0x34   :  { %s35_s0 = sshll.u32 %s1587_s30, 4  ;;  %s59_s18 = sshll.u32 %s1588_s17, 4  ;;  %s36_s0 = int_to_ptr.vmem [resolvable:$true] %s35_s0  ;;  %s60_s18 = int_to_ptr.vmem [resolvable:$true] %s59_s18 }
  0x35   :  { %s1411_s5 = scalar_lea.vmem %s36_s0, 128  ;;  %p1416_p7 = scmp.lt.s32.totalorder %s36_s0, %s36_s0 }
  0x36   :  { %p1412_p6 = scmp.ne.s32.totalorder %s36_s0, %s1411_s5  ;;  %p1417_p8 = scmp.lt.s32.totalorder %s1411_s5, %s1411_s5 }
  0x38   :  { %p1418_p9 = por %p1417_p8, %p1416_p7 }
  0x3a   :  { %p1419_p10 = pnand %p1418_p9, %p1412_p6 }
  0x3c   :  { %1422 = shalt.err (!%p1419_p10)
}
  0x3d   :  { %s1803_s1 = sld [smem:[#allocation32_spill]]  ;;  %s1431_s8 = scalar_lea.vmem %s60_s18, 256 }
  0x3e   :  { %p1432_p11 = scmp.ne.s32.totalorder %s60_s18, %s1431_s8  ;;  %p1436_p12 = scmp.lt.s32.totalorder %s60_s18, %s60_s18 }
  0x3f   :  { %p1437_p13 = scmp.lt.s32.totalorder %s1431_s8, %s1431_s8 }
  0x41   :  { %p1438_p0 = por %p1437_p13, %p1436_p12 }
  0x43   :  { %41 = dma.hbm_to_vmem [thread:$0]  %s1803_s1, 128, %s36_s0, [#allocation5], %s1581_s26, %s1581_s26, %s1582_s27  }
  0x44   :  { %p1439_p1 = pnand %p1438_p0, %p1432_p11 }
  0x46   :  { %1442 = shalt.err (!%p1439_p1)
}
  0x47   :  { %65 = dma.hbm_to_vmem [thread:$0]  %s1787_s2, 256, %s60_s18, [#allocation8], %s1585_s22, %s1585_s22, %s1586_s23  }
  0x48   :  { %s1589_s3 = smov [#allocation12]   ;;  %s1590_s28 = smov [#allocation15]  }
  0x49   :  { %s83_s24 = sshll.u32 %s1589_s3, 4  ;;  %s107_s29 = sshll.u32 %s1590_s28, 4  ;;  %s84_s24 = int_to_ptr.vmem [resolvable:$true] %s83_s24  ;;  %s108_s29 = int_to_ptr.vmem [resolvable:$true] %s107_s29 }
  0x4a   :  { %s1451_s30 = scalar_lea.vmem %s84_s24, 1024  ;;  %p1456_p3 = scmp.lt.s32.totalorder %s84_s24, %s84_s24 }
  0x4b   :  { %p1452_p2 = scmp.ne.s32.totalorder %s84_s24, %s1451_s30  ;;  %p1457_p4 = scmp.lt.s32.totalorder %s1451_s30, %s1451_s30 }
  0x4d   :  { %p1458_p5 = por %p1457_p4, %p1456_p3 }
  0x4f   :  { %p1459_p6 = pnand %p1458_p5, %p1452_p2 }
  0x51   :  { %1462 = shalt.err (!%p1459_p6)
}
  0x52   :  { %89 = dma.hbm_to_vmem [thread:$0]  %s1789_s4, 1024, %s84_s24, [#allocation11], %s1581_s26, %s1581_s26, %s1582_s27  }
  0x53   :  { %s1471_s2 = scalar_lea.vmem %s108_s29, 4096  ;;  %p1476_p8 = scmp.lt.s32.totalorder %s108_s29, %s108_s29 }
  0x54   :  { %p1472_p7 = scmp.ne.s32.totalorder %s108_s29, %s1471_s2  ;;  %p1477_p9 = scmp.lt.s32.totalorder %s1471_s2, %s1471_s2 }
  0x56   :  { %p1478_p10 = por %p1477_p9, %p1476_p8 }
  0x58   :  { %p1479_p11 = pnand %p1478_p10, %p1472_p7 }
  0x5a   :  { %1482 = shalt.err (!%p1479_p11)
}
  0x5b   :  { %113 = dma.hbm_to_vmem [thread:$0]  %s1791_s6, 4096, %s108_s29, [#allocation14], %s1585_s22, %s1585_s22, %s1586_s23  }
  0x5c   :  { %s1591_s19 = smov [#allocation18]   ;;  %s1592_s1 = smov [#allocation19]  }
  0x5d   :  { %s135_s20 = sshll.u32 %s1591_s19, 4  ;;  %s151_s8 = sshll.u32 %s1592_s1, 4  ;;  %s136_s20 = int_to_ptr.vmem [resolvable:$true] %s135_s20  ;;  %s152_s8 = int_to_ptr.vmem [resolvable:$true] %s151_s8 }
  0x5e   :  { %s1491_s4 = scalar_lea.vmem %s136_s20, 2048  ;;  %p1496_p13 = scmp.lt.s32.totalorder %s136_s20, %s136_s20 }
  0x5f   :  { %p1492_p12 = scmp.ne.s32.totalorder %s136_s20, %s1491_s4  ;;  %p1497_p0 = scmp.lt.s32.totalorder %s1491_s4, %s1491_s4 }
  0x61   :  { %p1498_p1 = por %p1497_p0, %p1496_p13 }
  0x63   :  { %p1499_p2 = pnand %p1498_p1, %p1492_p12 }
  0x65   :  { %1502 = shalt.err (!%p1499_p2)
}
  0x66   :  { %141 = dma.hbm_to_vmem [thread:$0]  %s1795_s10, 2048, %s136_s20, [#allocation17], %s1585_s22, %s1585_s22, %s1586_s23  }
  0x67   :  { %s1511_s6 = scalar_lea.vmem %s152_s8, 2048  ;;  %p1516_p4 = scmp.lt.s32.totalorder %s152_s8, %s152_s8 }
  0x68   :  { %p1512_p3 = scmp.ne.s32.totalorder %s152_s8, %s1511_s6  ;;  %p1517_p5 = scmp.lt.s32.totalorder %s1511_s6, %s1511_s6 }
  0x6a   :  { %p1518_p6 = por %p1517_p5, %p1516_p4 }
  0x6c   :  { %p1519_p7 = pnand %p1518_p6, %p1512_p3 }
  0x6e   :  { %1522 = shalt.err (!%p1519_p7)
}
  0x6f   :  { %157 = dma.hbm_to_vmem [thread:$0]  %s1798_s13, 2048, %s152_s8, [#allocation20], %s1585_s22, %s1585_s22, %s1586_s23  }
  0x70   :  { %1563 = dma.done.wait [#allocation5], 128  }
  0x71   :  { %1564 = vsyncadd [#allocation5], 4294967168 }
  0x72   :  { %1565 = dma.done.wait [#allocation8], 1280  }
  0x73   :  { %1566 = vsyncadd [#allocation8], 4294966016 }
  0x74   :  { %1567 = dma.done.wait [#allocation11], 1152  }
  0x75   :  { %1568 = vsyncadd [#allocation11], 4294966144 }
  0x76   :  { %1569 = dma.done.wait [#allocation14], 4352  }
  0x77   :  { %1570 = vsyncadd [#allocation14], 4294962944 }
  0x78   :  { %1571 = dma.done.wait [#allocation17], 6144  }
  0x79   :  { %1572 = vsyncadd [#allocation17], 4294961152 }
  0x7a   :  { %1573 = dma.done.wait [#allocation20], 2048  }
  0x7b   :  { %1574 = vsyncadd [#allocation20], 4294965248  ;;  %v1593_v0 = vmov 0.0   ;;  %vm1594_vm0 = vmmov 0   ;;  %v1277_v1 = vld [vmem:[#allocation7 + $0x38] sm:$0xff]   ;;  %v1278_v2 = vld [vmem:[#allocation12 + $0x38] sm:$0xff]  }
  0x7c   :  { %1146 = vmatprep.subr.bf16.mxu0 %v1593_v0  ;;  %1166 = vmatprep.subr.bf16.mxu1 %v1593_v0  ;;  %v1279_v3 = vld [vmem:[#allocation7 + $0x30] sm:$0xff]   ;;  %v1280_v4 = vld [vmem:[#allocation12 + $0x30] sm:$0xff]   ;;  %v1282_v6 = vld [vmem:[#allocation12 + $0x28] sm:$0xff]  }
  0x7d   :  { %1162 = vmatprep.mubr.msk.bf16.mxu0 %vm1594_vm0, %v1593_v0  ;;  %1182 = vmatprep.mubr.msk.bf16.mxu1 %vm1594_vm0, %v1593_v0  ;;  %v1281_v5 = vld [vmem:[#allocation7 + $0x28] sm:$0xff]   ;;  %v1283_v7 = vld [vmem:[#allocation7 + $0x20] sm:$0xff]   ;;  %v1284_v8 = vld [vmem:[#allocation12 + $0x20] sm:$0xff]  }
  0x7e   :  { %1147 = vmatpush3.bf16.msra.mxu0 %v1277_v1  ;;  %1167 = vmatpush3.bf16.msra.mxu1 %v1278_v2  ;;  %v1285_v9 = vld [vmem:[#allocation7 + $0x18] sm:$0xff]   ;;  %v1286_v10 = vld [vmem:[#allocation12 + $0x18] sm:$0xff]   ;;  %v1288_v12 = vld [vmem:[#allocation12 + $0x10] sm:$0xff]  }
  0x7f   :  { %1148 = vmatprep.subr.bf16.mxu0 %v1593_v0  ;;  %1168 = vmatprep.subr.bf16.mxu1 %v1593_v0  ;;  %v1287_v11 = vld [vmem:[#allocation7 + $0x10] sm:$0xff]   ;;  %v1289_v13 = vld [vmem:[#allocation7 + $0x8] sm:$0xff]   ;;  %v1290_v14 = vld [vmem:[#allocation12 + $0x8] sm:$0xff]  }
  0x80   :  { %v1291_v15 = vld [vmem:[#allocation7] sm:$0xff]   ;;  %v1292_v16 = vld [vmem:[#allocation12] sm:$0xff]   ;;  %v1294_v20 = vld [vmem:[#allocation10] sm:$0xff]  }
  0x81   :  { %v475_v17 = vld [vmem:[#allocation15 + $0xf8] sm:$0xff]  ;;  %v1293_v18 = vld [vmem:[#allocation4] sm:$0xff]   ;;  %v473_v27 = vld [vmem:[#allocation15 + $0xe8] sm:$0xff] }
  0x82   :  { %1149 = vmatpush3.bf16.msra.mxu0 %v1279_v3  ;;  %1169 = vmatpush3.bf16.msra.mxu1 %v1280_v4  ;;  %v593_v19 = vld [vmem:[#allocation16 + $0xf8] sm:$0xff]  ;;  %v474_v23 = vld [vmem:[#allocation15 + $0xf0] sm:$0xff]  ;;  %v591_v28 = vld [vmem:[#allocation16 + $0xe8] sm:$0xff] }
  0x83   :  { %1150 = vmatprep.subr.bf16.mxu0 %v1593_v0  ;;  %1170 = vmatprep.subr.bf16.mxu1 %v1593_v0  ;;  %v459_v21 = vld [vmem:[#allocation15 + $0x78] sm:$0xff]  ;;  %v592_v24 = vld [vmem:[#allocation16 + $0xf0] sm:$0xff]  ;;  %v457_v29 = vld [vmem:[#allocation15 + $0x68] sm:$0xff] }
  0x84   :  { %v577_v22 = vld [vmem:[#allocation16 + $0x78] sm:$0xff]  ;;  %v458_v25 = vld [vmem:[#allocation15 + $0x70] sm:$0xff]  ;;  %v575_v30 = vld [vmem:[#allocation16 + $0x68] sm:$0xff] }
  0x85   :  { %v576_v26 = vld [vmem:[#allocation16 + $0x70] sm:$0xff]  ;;  %v472_v31 = vld [vmem:[#allocation15 + $0xe0] sm:$0xff]  ;;  %v471_v35 = vld [vmem:[#allocation15 + $0xd8] sm:$0xff] }
  0x86   :  { %1151 = vmatpush3.bf16.msra.mxu0 %v1281_v5  ;;  %1171 = vmatpush3.bf16.msra.mxu1 %v1282_v6  ;;  %v590_v32 = vld [vmem:[#allocation16 + $0xe0] sm:$0xff]  ;;  %v589_v36 = vld [vmem:[#allocation16 + $0xd8] sm:$0xff]  ;;  %v470_v39 = vld [vmem:[#allocation15 + $0xd0] sm:$0xff] }
  0x87   :  { %1152 = vmatprep.subr.bf16.mxu0 %v1593_v0  ;;  %1172 = vmatprep.subr.bf16.mxu1 %v1593_v0  ;;  %v456_v33 = vld [vmem:[#allocation15 + $0x60] sm:$0xff]  ;;  %v455_v37 = vld [vmem:[#allocation15 + $0x58] sm:$0xff]  ;;  %v588_v40 = vld [vmem:[#allocation16 + $0xd0] sm:$0xff] }
  0x88   :  { %v574_v34 = vld [vmem:[#allocation16 + $0x60] sm:$0xff]  ;;  %v573_v38 = vld [vmem:[#allocation16 + $0x58] sm:$0xff]  ;;  %v454_v41 = vld [vmem:[#allocation15 + $0x50] sm:$0xff] }
  0x89   :  { %v572_v42 = vld [vmem:[#allocation16 + $0x50] sm:$0xff]  ;;  %v469_v43 = vld [vmem:[#allocation15 + $0xc8] sm:$0xff]  ;;  %v468_v47 = vld [vmem:[#allocation15 + $0xc0] sm:$0xff] }
  0x8a   :  { %1153 = vmatpush3.bf16.msra.mxu0 %v1283_v7  ;;  %1173 = vmatpush3.bf16.msra.mxu1 %v1284_v8  ;;  %v587_v44 = vld [vmem:[#allocation16 + $0xc8] sm:$0xff]  ;;  %v586_v48 = vld [vmem:[#allocation16 + $0xc0] sm:$0xff]  ;;  %v467_v51 = vld [vmem:[#allocation15 + $0xb8] sm:$0xff] }
  0x8b   :  { %1154 = vmatprep.subr.bf16.mxu0 %v1593_v0  ;;  %1174 = vmatprep.subr.bf16.mxu1 %v1593_v0  ;;  %v453_v45 = vld [vmem:[#allocation15 + $0x48] sm:$0xff]  ;;  %v452_v49 = vld [vmem:[#allocation15 + $0x40] sm:$0xff]  ;;  %v585_v52 = vld [vmem:[#allocation16 + $0xb8] sm:$0xff] }
  0x8c   :  { %v571_v46 = vld [vmem:[#allocation16 + $0x48] sm:$0xff]  ;;  %v570_v50 = vld [vmem:[#allocation16 + $0x40] sm:$0xff]  ;;  %v451_v53 = vld [vmem:[#allocation15 + $0x38] sm:$0xff] }
  0x8d   :  { %v569_v54 = vld [vmem:[#allocation16 + $0x38] sm:$0xff]  ;;  %v466_v55 = vld [vmem:[#allocation15 + $0xb0] sm:$0xff]  ;;  %v465_v59 = vld [vmem:[#allocation15 + $0xa8] sm:$0xff] }
  0x8e   :  { %1155 = vmatpush3.bf16.msra.mxu0 %v1285_v9  ;;  %1175 = vmatpush3.bf16.msra.mxu1 %v1286_v10  ;;  %v584_v56 = vld [vmem:[#allocation16 + $0xb0] sm:$0xff]  ;;  %v583_v60 = vld [vmem:[#allocation16 + $0xa8] sm:$0xff]  ;;  %v464_v63 = vld [vmem:[#allocation15 + $0xa0] sm:$0xff] }
  0x8f   :  { %1156 = vmatprep.subr.bf16.mxu0 %v1593_v0  ;;  %1176 = vmatprep.subr.bf16.mxu1 %v1593_v0  ;;  %v450_v57 = vld [vmem:[#allocation15 + $0x30] sm:$0xff]  ;;  %v449_v61 = vld [vmem:[#allocation15 + $0x28] sm:$0xff]  ;;  %v448_v1 = vld [vmem:[#allocation15 + $0x20] sm:$0xff] }
  0x90   :  { %v568_v58 = vld [vmem:[#allocation16 + $0x30] sm:$0xff]  ;;  %v567_v62 = vld [vmem:[#allocation16 + $0x28] sm:$0xff]  ;;  %v566_v2 = vld [vmem:[#allocation16 + $0x20] sm:$0xff] }
  0x91   :  { %v463_v3 = vld [vmem:[#allocation15 + $0x98] sm:$0xff]  ;;  %v462_v7 = vld [vmem:[#allocation15 + $0x90] sm:$0xff] }
  0x92   :  { %1157 = vmatpush3.bf16.msra.mxu0 %v1287_v11  ;;  %1177 = vmatpush3.bf16.msra.mxu1 %v1288_v12  ;;  %v581_v4 = vld [vmem:[#allocation16 + $0x98] sm:$0xff]  ;;  %v580_v8 = vld [vmem:[#allocation16 + $0x90] sm:$0xff]  ;;  %v461_v11 = vld [vmem:[#allocation15 + $0x88] sm:$0xff] }
  0x93   :  { %1158 = vmatprep.subr.bf16.mxu0 %v1593_v0  ;;  %1178 = vmatprep.subr.bf16.mxu1 %v1593_v0  ;;  %v447_v5 = vld [vmem:[#allocation15 + $0x18] sm:$0xff]  ;;  %v446_v9 = vld [vmem:[#allocation15 + $0x10] sm:$0xff]  ;;  %v579_v12 = vld [vmem:[#allocation16 + $0x88] sm:$0xff] }
  0x94   :  { %v565_v6 = vld [vmem:[#allocation16 + $0x18] sm:$0xff]  ;;  %v564_v10 = vld [vmem:[#allocation16 + $0x10] sm:$0xff] }
  0x96   :  { %1159 = vmatpush3.bf16.msra.mxu0 %v1289_v13  ;;  %1179 = vmatpush3.bf16.msra.mxu1 %v1290_v14  ;;  %v445_v13 = vld [vmem:[#allocation15 + $0x8] sm:$0xff] }
  0x97   :  { %1160 = vmatprep.subr.bf16.mxu0 %v1593_v0  ;;  %1180 = vmatprep.subr.bf16.mxu1 %v1593_v0  ;;  %v582_v0 = vld [vmem:[#allocation16 + $0xa0] sm:$0xff]  ;;  %v563_v14 = vld [vmem:[#allocation16 + $0x8] sm:$0xff] }
  0x9a   :  { %1161 = vmatpush3.bf16.msra.mxu0 %v1291_v15  ;;  %1181 = vmatpush3.bf16.msra.mxu1 %v1292_v16  ;;  %v460_v15 = vld [vmem:[#allocation15 + $0x80] sm:$0xff] }
  0x9b   :  { %1032 = vmatprep.subr.mxu0 %v475_v17  ;;  %1070 = vmatprep.subr.mxu1 %v593_v19  ;;  %v578_v16 = vld [vmem:[#allocation16 + $0x80] sm:$0xff] }
  0x9c   :  { %v444_v17 = vld [vmem:[#allocation15] sm:$0xff] }
  0x9d   :  { %1163 = vmatmul.mubr.bf16.vlgmr.msra.gmra.mxu0 %v1293_v18  ;;  %1183 = vmatmul.mubr.bf16.vlgmr.msra.gmra.mxu1 %v1294_v20  ;;  %v442_v18 = vld [vmem:[#allocation9] sm:$0xff]  ;;  %v562_v19 = vld [vmem:[#allocation16] sm:$0xff]  ;;  %v560_v20 = vld [vmem:[#allocation13] sm:$0xff] }
  0x9e   :  { %1033 = vmatpush3.msra.mxu0 %v459_v21  ;;  %1071 = vmatpush3.msra.mxu1 %v577_v22  ;;  %v691_v21 = vld [vmem:[#allocation18 + $0x78] sm:$0xff]  ;;  %v443_v22 = vld [vmem:[#allocation9 + $0x8] sm:$0xff] }
  0x9f   :  { %1034 = vmatprep.subr.mxu0 %v474_v23  ;;  %1072 = vmatprep.subr.mxu1 %v592_v24  ;;  %v561_v24 = vld [vmem:[#allocation13 + $0x8] sm:$0xff] }
  0xa0   :  { %1035 = vmatpush3.msra.mxu0 %v458_v25  ;;  %1073 = vmatpush3.msra.mxu1 %v576_v26  ;;  %v690_v26 = vld [vmem:[#allocation18 + $0x70] sm:$0xff] }
  0xa1   :  { %1036 = vmatprep.subr.mxu0 %v473_v27  ;;  %1074 = vmatprep.subr.mxu1 %v591_v28 }
  0xa2   :  { %1037 = vmatpush3.msra.mxu0 %v457_v29  ;;  %1075 = vmatpush3.msra.mxu1 %v575_v30  ;;  %v689_v30 = vld [vmem:[#allocation18 + $0x68] sm:$0xff] }
  0xa3   :  { %1038 = vmatprep.subr.mxu0 %v472_v31  ;;  %1076 = vmatprep.subr.mxu1 %v590_v32 }
  0xa4   :  { %1039 = vmatpush3.msra.mxu0 %v456_v33  ;;  %1077 = vmatpush3.msra.mxu1 %v574_v34  ;;  %v688_v33 = vld [vmem:[#allocation18 + $0x60] sm:$0xff] }
  0xa5   :  { %1040 = vmatprep.subr.mxu0 %v471_v35  ;;  %1078 = vmatprep.subr.mxu1 %v589_v36  ;;  %v687_v35 = vld [vmem:[#allocation18 + $0x58] sm:$0xff]  ;;  %v686_v36 = vld [vmem:[#allocation18 + $0x50] sm:$0xff] }
  0xa6   :  { %1041 = vmatpush3.msra.mxu0 %v455_v37  ;;  %1079 = vmatpush3.msra.mxu1 %v573_v38  ;;  %v685_v37 = vld [vmem:[#allocation18 + $0x48] sm:$0xff]  ;;  %v684_v38 = vld [vmem:[#allocation18 + $0x40] sm:$0xff] }
  0xa7   :  { %1042 = vmatprep.subr.mxu0 %v470_v39  ;;  %1080 = vmatprep.subr.mxu1 %v588_v40  ;;  %v683_v39 = vld [vmem:[#allocation18 + $0x38] sm:$0xff]  ;;  %v682_v40 = vld [vmem:[#allocation18 + $0x30] sm:$0xff] }
  0xa8   :  { %1043 = vmatpush3.msra.mxu0 %v454_v41  ;;  %1081 = vmatpush3.msra.mxu1 %v572_v42  ;;  %v681_v41 = vld [vmem:[#allocation18 + $0x28] sm:$0xff]  ;;  %v680_v42 = vld [vmem:[#allocation18 + $0x20] sm:$0xff] }
  0xa9   :  { %1044 = vmatprep.subr.mxu0 %v469_v43  ;;  %1082 = vmatprep.subr.mxu1 %v587_v44  ;;  %v679_v43 = vld [vmem:[#allocation18 + $0x18] sm:$0xff]  ;;  %v678_v44 = vld [vmem:[#allocation18 + $0x10] sm:$0xff] }
  0xaa   :  { %1045 = vmatpush3.msra.mxu0 %v453_v45  ;;  %1083 = vmatpush3.msra.mxu1 %v571_v46  ;;  %v677_v45 = vld [vmem:[#allocation18 + $0x8] sm:$0xff]  ;;  %v676_v46 = vld [vmem:[#allocation18] sm:$0xff] }
  0xab   :  { %1046 = vmatprep.subr.mxu0 %v468_v47  ;;  %1084 = vmatprep.subr.mxu1 %v586_v48 }
  0xac   :  { %1047 = vmatpush3.msra.mxu0 %v452_v49  ;;  %1085 = vmatpush3.msra.mxu1 %v570_v50  ;;  %v1007_v49 = vld [vmem:[%s1792_s7] ss:$0 sm:$0xff] }
  0xad   :  { %1048 = vmatprep.subr.mxu0 %v467_v51  ;;  %1086 = vmatprep.subr.mxu1 %v585_v52 }
  0xae   :  { %1049 = vmatpush3.msra.mxu0 %v451_v53  ;;  %1087 = vmatpush3.msra.mxu1 %v569_v54 }
  0xaf   :  { %1050 = vmatprep.subr.mxu0 %v466_v55  ;;  %1088 = vmatprep.subr.mxu1 %v584_v56 }
  0xb0   :  { %1051 = vmatpush3.msra.mxu0 %v450_v57  ;;  %1089 = vmatpush3.msra.mxu1 %v568_v58  ;;  %v1008_v58 = vld [vmem:[%s1794_s9] ss:$0 sm:$0xff] }
  0xb1   :  { %1052 = vmatprep.subr.mxu0 %v465_v59  ;;  %1090 = vmatprep.subr.mxu1 %v583_v60 }
  0xb2   :  { %1053 = vmatpush3.msra.mxu0 %v449_v61  ;;  %1091 = vmatpush3.msra.mxu1 %v567_v62 }
  0xb3   :  { %1054 = vmatprep.subr.mxu0 %v464_v63  ;;  %1092 = vmatprep.subr.mxu1 %v582_v0 }
  0xb4   :  { %1055 = vmatpush3.msra.mxu0 %v448_v1  ;;  %1093 = vmatpush3.msra.mxu1 %v566_v2  ;;  %v1009_v1 = vld [vmem:[%s1796_s11] ss:$0 sm:$0xff]  ;;  %s1595_s11 = smov [#allocation21]  }
  0xb5   :  { %1056 = vmatprep.subr.mxu0 %v463_v3  ;;  %1094 = vmatprep.subr.mxu1 %v581_v4 }
  0xb6   :  { %1057 = vmatpush3.msra.mxu0 %v447_v5  ;;  %1095 = vmatpush3.msra.mxu1 %v565_v6 }
  0xb7   :  { %1058 = vmatprep.subr.mxu0 %v462_v7  ;;  %1096 = vmatprep.subr.mxu1 %v580_v8 }
  0xb8   :  { %1059 = vmatpush3.msra.mxu0 %v446_v9  ;;  %1097 = vmatpush3.msra.mxu1 %v564_v10  ;;  %v1010_v10 = vld [vmem:[%s1797_s12] ss:$0 sm:$0xff]  ;;  %s956_s12 = sshll.u32 %s1595_s11, 4  ;;  %s957_s12 = int_to_ptr.vmem [resolvable:$true] %s956_s12 }
  0xb9   :  { %1060 = vmatprep.subr.mxu0 %v461_v11  ;;  %1098 = vmatprep.subr.mxu1 %v579_v12  ;;  %s1523_s30 = scalar_lea.vmem %s957_s12, 256  ;;  %p1528_p9 = scmp.lt.s32.totalorder %s957_s12, %s957_s12 }
  0xba   :  { %1061 = vmatpush3.msra.mxu0 %v445_v13  ;;  %1099 = vmatpush3.msra.mxu1 %v563_v14  ;;  %p1524_p8 = scmp.ne.s32.totalorder %s957_s12, %s1523_s30  ;;  %p1529_p10 = scmp.lt.s32.totalorder %s1523_s30, %s1523_s30 }
  0xbb   :  { %1062 = vmatprep.subr.mxu0 %v460_v15  ;;  %1100 = vmatprep.subr.mxu1 %v578_v16 }
  0xbc   :  { %1063 = vmatpush3.msra.mxu0 %v444_v17  ;;  %547 = vmatprep.mubr.f32.mxu0 %v442_v18  ;;  %p1530_p11 = por %p1529_p10, %p1528_p9 }
  0xbd   :  { %1101 = vmatpush3.msra.mxu1 %v562_v19  ;;  %665 = vmatprep.mubr.f32.mxu1 %v560_v20  ;;  %v852_v19 = vld [vmem:[#allocation19 + $0x78] sm:$0xff]  ;;  %v851_v20 = vld [vmem:[#allocation19 + $0x70] sm:$0xff] }
  0xbe   :  { %1186 = vmatprep.subr.mxu0 %v691_v21  ;;  %1224 = vmatprep.subr.mxu1 %v852_v19  ;;  %p1531_p12 = pnand %p1530_p11, %p1524_p8 }
 0x15d   :  { %v307_v23 = vpop.f32.mrf.mxu0  ;;  %v426_v25 = vpop.f32.mrf.mxu1 }
 0x15e   :  { %548 = vmatmul.mubr.f32.vlgmr.msra.gmra.mxu0 %v307_v23  ;;  %666 = vmatmul.mubr.f32.vlgmr.msra.gmra.mxu1 %v426_v25  ;;  %v848_v23 = vld [vmem:[#allocation19 + $0x58] sm:$0xff]  ;;  %v846_v25 = vld [vmem:[#allocation19 + $0x48] sm:$0xff] }
 0x15f   :  { %v1164_v27 = vpop.f32.mrf.mxu0  ;;  %552 = vmatprep.mubr.f32.mxu0 %v443_v22  ;;  %v1184_v28 = vpop.f32.mrf.mxu1  ;;  %670 = vmatprep.mubr.f32.mxu1 %v561_v24  ;;  %v849_v22 = vld [vmem:[#allocation19 + $0x60] sm:$0xff]  ;;  %v847_v24 = vld [vmem:[#allocation19 + $0x50] sm:$0xff] }
 0x160   :  { %1187 = vmatpush3.msra.mxu0 %v691_v21  ;;  %1225 = vmatpush3.msra.mxu1 %v852_v19  ;;  %v850_v21 = vld [vmem:[#allocation19 + $0x68] sm:$0xff]  ;;  %v844_v27 = vld [vmem:[#allocation19 + $0x38] sm:$0xff]  ;;  %v843_v28 = vld [vmem:[#allocation19 + $0x30] sm:$0xff] }
 0x161   :  { %v310_v29 = vpop.f32.mrf.mxu0  ;;  %1188 = vmatprep.subr.mxu0 %v690_v26  ;;  %v429_v31 = vpop.f32.mrf.mxu1  ;;  %1226 = vmatprep.subr.mxu1 %v851_v20 }
 0x162   :  { %553 = vmatmul.mubr.f32.gmra.mxu0 %v310_v29  ;;  %671 = vmatmul.mubr.f32.gmra.mxu1 %v429_v31  ;;  %v842_v29 = vld [vmem:[#allocation19 + $0x28] sm:$0xff]  ;;  %v840_v31 = vld [vmem:[#allocation19 + $0x18] sm:$0xff] }
 0x163   :  { %v1165_v32 = vpop.f32.mrf.mxu0  ;;  %1189 = vmatpush3.msra.mxu0 %v690_v26  ;;  %v1185_v34 = vpop.f32.mrf.mxu1  ;;  %1227 = vmatpush3.msra.mxu1 %v851_v20  ;;  %v845_v26 = vld [vmem:[#allocation19 + $0x40] sm:$0xff] }
 0x164   :  { %1190 = vmatprep.subr.mxu0 %v689_v30  ;;  %1228 = vmatprep.subr.mxu1 %v850_v21  ;;  %v839_v32 = vld [vmem:[#allocation19 + $0x10] sm:$0xff]  ;;  %v837_v34 = vld [vmem:[#allocation19] sm:$0xff] }
 0x165   :  { %1191 = vmatpush3.msra.mxu0 %v689_v30  ;;  %1229 = vmatpush3.msra.mxu1 %v850_v21  ;;  %v841_v30 = vld [vmem:[#allocation19 + $0x20] sm:$0xff] }
 0x166   :  { %1192 = vmatprep.subr.mxu0 %v688_v33  ;;  %1230 = vmatprep.subr.mxu1 %v849_v22 }
 0x167   :  { %1193 = vmatpush3.msra.mxu0 %v688_v33  ;;  %1231 = vmatpush3.msra.mxu1 %v849_v22  ;;  %v838_v33 = vld [vmem:[#allocation19 + $0x8] sm:$0xff] }
 0x168   :  { %1194 = vmatprep.subr.mxu0 %v687_v35  ;;  %1232 = vmatprep.subr.mxu1 %v848_v23 }
 0x169   :  { %1195 = vmatpush3.msra.mxu0 %v687_v35  ;;  %1233 = vmatpush3.msra.mxu1 %v848_v23 }
 0x16a   :  { %1196 = vmatprep.subr.mxu0 %v686_v36  ;;  %1234 = vmatprep.subr.mxu1 %v847_v24 }
 0x16b   :  { %1197 = vmatpush3.msra.mxu0 %v686_v36  ;;  %1235 = vmatpush3.msra.mxu1 %v847_v24 }
 0x16c   :  { %1198 = vmatprep.subr.mxu0 %v685_v37  ;;  %1236 = vmatprep.subr.mxu1 %v846_v25 }
 0x16d   :  { %1199 = vmatpush3.msra.mxu0 %v685_v37  ;;  %1237 = vmatpush3.msra.mxu1 %v846_v25 }
 0x16e   :  { %1200 = vmatprep.subr.mxu0 %v684_v38  ;;  %1238 = vmatprep.subr.mxu1 %v845_v26 }
 0x16f   :  { %1201 = vmatpush3.msra.mxu0 %v684_v38  ;;  %1239 = vmatpush3.msra.mxu1 %v845_v26 }
 0x170   :  { %1202 = vmatprep.subr.mxu0 %v683_v39  ;;  %1240 = vmatprep.subr.mxu1 %v844_v27 }
 0x171   :  { %1203 = vmatpush3.msra.mxu0 %v683_v39  ;;  %1241 = vmatpush3.msra.mxu1 %v844_v27 }
 0x172   :  { %1204 = vmatprep.subr.mxu0 %v682_v40  ;;  %1242 = vmatprep.subr.mxu1 %v843_v28 }
 0x173   :  { %1205 = vmatpush3.msra.mxu0 %v682_v40  ;;  %1243 = vmatpush3.msra.mxu1 %v843_v28 }
 0x174   :  { %1206 = vmatprep.subr.mxu0 %v681_v41  ;;  %1244 = vmatprep.subr.mxu1 %v842_v29 }
 0x175   :  { %1207 = vmatpush3.msra.mxu0 %v681_v41  ;;  %1245 = vmatpush3.msra.mxu1 %v842_v29 }
 0x176   :  { %1208 = vmatprep.subr.mxu0 %v680_v42  ;;  %1246 = vmatprep.subr.mxu1 %v841_v30 }
 0x177   :  { %1209 = vmatpush3.msra.mxu0 %v680_v42  ;;  %1247 = vmatpush3.msra.mxu1 %v841_v30 }
 0x178   :  { %1210 = vmatprep.subr.mxu0 %v679_v43  ;;  %1248 = vmatprep.subr.mxu1 %v840_v31 }
 0x179   :  { %1211 = vmatpush3.msra.mxu0 %v679_v43  ;;  %1249 = vmatpush3.msra.mxu1 %v840_v31 }
 0x17a   :  { %1212 = vmatprep.subr.mxu0 %v678_v44  ;;  %1250 = vmatprep.subr.mxu1 %v839_v32 }
 0x17b   :  { %1213 = vmatpush3.msra.mxu0 %v678_v44  ;;  %1251 = vmatpush3.msra.mxu1 %v839_v32 }
 0x17c   :  { %1214 = vmatprep.subr.mxu0 %v677_v45  ;;  %1252 = vmatprep.subr.mxu1 %v838_v33 }
 0x17d   :  { %1215 = vmatpush3.msra.mxu0 %v677_v45  ;;  %1253 = vmatpush3.msra.mxu1 %v838_v33 }
 0x17e   :  { %1216 = vmatprep.subr.mxu0 %v676_v46  ;;  %1254 = vmatprep.subr.mxu1 %v837_v34 }
 0x17f   :  { %1217 = vmatpush3.msra.mxu0 %v676_v46  ;;  %1255 = vmatpush3.msra.mxu1 %v837_v34 }
 0x21e   :  { %v1064_v47 = vpop.f32.mrf.mxu0  ;;  %v1102_v48 = vpop.f32.mrf.mxu1 }
 0x220   :  { %v1065_v50 = vpop.f32.mrf.mxu0  ;;  %v1103_v52 = vpop.f32.mrf.mxu1 }
 0x221   :  { %v1066_v51 = vadd.f32 %v1065_v50, %v1064_v47  ;;  %v1104_v56 = vadd.f32 %v1103_v52, %v1102_v48 }
 0x222   :  { %v1067_v53 = vpop.f32.mrf.mxu0  ;;  %v1105_v55 = vpop.f32.mrf.mxu1 }
 0x223   :  { %v1745_v54 = vadd.f32 %v1066_v51, %v1007_v49  ;;  %v1753_v63 = vadd.f32 %v1104_v56, %v1008_v58 }
 0x224   :  { %v1068_v57 = vpop.f32.mrf.mxu0  ;;  %v1106_v60 = vpop.f32.mrf.mxu1 }
 0x225   :  { %v1069_v59 = vadd.f32 %v1068_v57, %v1067_v53  ;;  %1218 = vmatprep.mubr.f32.mxu0 %v1745_v54  ;;  %v1107_v62 = vadd.f32 %v1106_v60, %v1105_v55 }
 0x227   :  { %v1751_v61 = vadd.f32 %v1069_v59, %v1007_v49  ;;  %v1757_v0 = vadd.f32 %v1107_v62, %v1008_v58 }
 0x229   :  { %1219 = vmatmul.mubr.f32.vlgmr.msra.gmra.mxu0 %v1751_v61 }
 0x22a   :  { %1221 = vmatprep.mubr.f32.mxu0 %v1753_v63 }
 0x22d   :  { %1222 = vmatmul.mubr.f32.gmra.mxu0 %v1757_v0 }
 0x2e9   :  { %v1220_v2 = vpop.f32.mrf.mxu0 }
 0x2ea   :  { %v771_v3 = vadd.f32 %v1220_v2, %v1009_v1 }
 0x2eb   :  { %v765_v4 = vpop.f32.mrf.mxu0 }
 0x2ec   :  { %1295 = vtanh.f32 %v771_v3  ;;  %v766_v5 = vadd.f32 %v1009_v1, %v765_v4 }
 0x2ed   :  { %v1223_v6 = vpop.f32.mrf.mxu0 }
 0x2ee   :  { %1297 = vtanh.f32 %v766_v5  ;;  %v781_v7 = vadd.f32 %v1223_v6, %v1009_v1 }
 0x2ef   :  { %v775_v8 = vpop.f32.mrf.mxu0 }
 0x2f0   :  { %1299 = vtanh.f32 %v781_v7  ;;  %v776_v9 = vadd.f32 %v1009_v1, %v775_v8 }
 0x2f2   :  { %1301 = vtanh.f32 %v776_v9 }
 0x2f9   :  { %v1296_v11 = vpop.eup %1295 }
 0x2fa   :  { %v796_v12 = vmul.f32 %v1296_v11, %v1010_v10 }
 0x2fb   :  { %v1298_v13 = vpop.eup %1297 }
 0x2fc   :  { %801 = vadd.xlane.f32.xlu1 %v796_v12  ;;  %v795_v14 = vmul.f32 %v1298_v13, %v1010_v10 }
 0x2fd   :  { %v1300_v15 = vpop.eup %1299 }
 0x2fe   :  { %799 = vadd.xlane.f32.xlu0 %v795_v14  ;;  %v798_v16 = vmul.f32 %v1300_v15, %v1010_v10 }
 0x2ff   :  { %v1302_v17 = vpop.eup %1301 }
 0x300   :  { %805 = vadd.xlane.f32.xlu1 %v798_v16  ;;  %v797_v18 = vmul.f32 %v1302_v17, %v1010_v10 }
 0x302   :  { %803 = vadd.xlane.f32.xlu0 %v797_v18 }
 0x385   :  { %v802_v35 = vpop.xlane.xlu1 %801 }
 0x387   :  { %v800_v36 = vpop.xlane.xlu0 %799 }
 0x389   :  { %v806_v37 = vpop.xlane.xlu1 %805 }
 0x38a   :  { %v808_v38 = vmax.f32 %v802_v35, %v806_v37 }
 0x38b   :  { %v804_v39 = vpop.xlane.xlu0 %803 }
 0x38c   :  { %v810_v40 = vsub.f32 %v802_v35, %v808_v38  ;;  %v816_v41 = vsub.f32 %v806_v37, %v808_v38  ;;  %v807_v42 = vmax.f32 %v800_v36, %v804_v39 }
 0x38e   :  { %v813_v43 = vmul.f32 1.442695, %v810_v40  ;;  %v819_v44 = vmul.f32 1.442695, %v816_v41  ;;  %v809_v45 = vsub.f32 %v800_v36, %v807_v42  ;;  %v815_v46 = vsub.f32 %v804_v39, %v807_v42 }
 0x390   :  { %1303 = vpow2.f32 %v813_v43  ;;  %v811_v47 = vmul.f32 1.442695, %v809_v45  ;;  %v817_v48 = vmul.f32 1.442695, %v815_v46 }
 0x391   :  { %1305 = vpow2.f32 %v819_v44 }
 0x392   :  { %1307 = vpow2.f32 %v811_v47 }
 0x393   :  { %1309 = vpow2.f32 %v817_v48 }
 0x39d   :  { %v1304_v49 = vpop.eup %1303 }
 0x39e   :  { %v1306_v50 = vpop.eup %1305 }
 0x39f   :  { %v1308_v51 = vpop.eup %1307  ;;  %v822_v52 = vadd.f32 %v1306_v50, %v1304_v49 }
 0x3a0   :  { %v1310_v53 = vpop.eup %1309 }
 0x3a1   :  { %1311 = vrcp.f32 %v822_v52  ;;  %v821_v55 = vadd.f32 %v1310_v53, %v1308_v51 }
 0x3a3   :  { %1313 = vrcp.f32 %v821_v55 }
 0x3ae   :  { %v1312_v56 = vpop.eup %1311 }
 0x3af   :  { %v830_v57 = vmul.f32 %v1312_v56, %v1306_v50  ;;  %v826_v58 = vmul.f32 %v1312_v56, %v1304_v49 }
 0x3b0   :  { %v1314_v59 = vpop.eup %1313 }
 0x3b1   :  { %v825_v60 = vmul.f32 %v1314_v59, %v1308_v51  ;;  %v829_v62 = vmul.f32 %v1314_v59, %v1310_v53  ;;  %v828_v1 = vmul.f32 %v826_v58, %v1751_v61  ;;  %v832_v2 = vmul.f32 %v830_v57, %v1757_v0 }
 0x3b3   :  { %v827_v3 = vmul.f32 %v825_v60, %v1745_v54  ;;  %v831_v4 = vmul.f32 %v829_v62, %v1753_v63  ;;  %v834_v5 = vadd.f32 %v832_v2, %v828_v1 }
 0x3b5   :  { %v833_v6 = vadd.f32 %v831_v4, %v827_v3  ;;  %v836_v7 = vmax.f32 %v834_v5, 0.0 }
 0x3b7   :  { %v835_v8 = vmax.f32 %v833_v6, 0.0  ;;  %948 = vst [vmem:[#allocation21 + $0x8] sm:$0xff] %v836_v7 }
 0x3b9   :  { %1256 = vmatprep.mubr.f32.mxu1 %v835_v8  ;;  %947 = vst [vmem:[#allocation21] sm:$0xff] %v835_v8 }
 0x3ba   :  { %1257 = vmatmul.mubr.f32.vlgmr.msra.gmra.mxu1 %v836_v7 }
 0x3bb   :  { %1534 = shalt.err (!%p1531_p12)
}
 0x3bc   :  { %962 = dma.vmem_to_hbm [thread:$0]  %s957_s12, 256, %s1800_s15, [#allocation6], %s1585_s22, %s1585_s22, %s1586_s23  }
 0x3bd   :  { %v1011_v54 = vld [vmem:[%s1799_s14] ss:$0 sm:$0xff]  ;;  %s1596_s5 = smov [#allocation22]  }
 0x3be   :  { %s968_s15 = sshll.u32 %s1596_s5, 4  ;;  %s969_s15 = int_to_ptr.vmem [resolvable:$true] %s968_s15 }
 0x3bf   :  { %s1543_s14 = scalar_lea.vmem %s969_s15, 256  ;;  %p1548_p0 = scmp.lt.s32.totalorder %s969_s15, %s969_s15 }
 0x3c0   :  { %p1544_p13 = scmp.ne.s32.totalorder %s969_s15, %s1543_s14  ;;  %p1549_p1 = scmp.lt.s32.totalorder %s1543_s14, %s1543_s14 }
 0x3c2   :  { %p1550_p2 = por %p1549_p1, %p1548_p0 }
 0x3c4   :  { %p1551_p3 = pnand %p1550_p2, %p1544_p13 }
 0x47a   :  { %v1258_v61 = vpop.f32.mrf.mxu1 }
 0x47b   :  { %v932_v63 = vadd.f32 %v1258_v61, %v1011_v54 }
 0x47c   :  { %v926_v0 = vpop.f32.mrf.mxu1 }
 0x47d   :  { %v1013_v9 = vmul.f32 -1.442695, %v932_v63  ;;  %v927_v10 = vadd.f32 %v1011_v54, %v926_v0 }
 0x47f   :  { %1315 = vpow2.f32 %v1013_v9  ;;  %v1012_v11 = vmul.f32 -1.442695, %v927_v10 }
 0x481   :  { %1317 = vpow2.f32 %v1012_v11 }
 0x48c   :  { %v1316_v12 = vpop.eup %1315 }
 0x48d   :  { %v942_v13 = vadd.f32 1.0, %v1316_v12 }
 0x48e   :  { %v1318_v14 = vpop.eup %1317 }
 0x48f   :  { %1319 = vrcp.f32 %v942_v13  ;;  %v941_v15 = vadd.f32 1.0, %v1318_v14 }
 0x491   :  { %1321 = vrcp.f32 %v941_v15 }
 0x49c   :  { %v1320_v16 = vpop.eup %1319 }
 0x49d   :  { %950 = vst [vmem:[#allocation22 + $0x8] sm:$0xff] %v1320_v16 }
 0x49e   :  { %v1322_v17 = vpop.eup %1321 }
 0x49f   :  { %949 = vst [vmem:[#allocation22] sm:$0xff] %v1322_v17 }
 0x4a0   :  { %1554 = shalt.err (!%p1551_p3)
}
 0x4a1   :  { %974 = dma.vmem_to_hbm [thread:$0]  %s969_s15, 256, %s1801_s16, [#allocation23], %s1585_s22, %s1585_s22, %s1586_s23  }
 0x4a2   :  { %1575 = dma.done.wait [#allocation6], 256  }
 0x4a3   :  { %1576 = vsyncadd [#allocation6], 4294967040 }
 0x4a4   :  { %1577 = dma.done.wait [#allocation23], 256  }
 0x4a5   :  { %1578 = vsyncadd [#allocation23], 4294967040 }
 0x4a6   :  { %981 = vsyncpa [#allocation5], 1 }
 0x4a7   :  { %982 = vsyncpa [#allocation8], 1 }
 0x4a8   :  { %983 = vsyncpa [#allocation11], 1 }
 0x4a9   :  { %984 = vsyncpa [#allocation14], 1 }
 0x4aa   :  { %985 = vsyncpa [#allocation17], 1 }
 0x4ab   :  { %986 = vsyncpa [#allocation20], 1 }
 0x4ac   :  { %987 = vsyncpa [#allocation6], 1 }
 0x4ad   :  { %988 = vsyncpa [#allocation23], 1 }

</bundles_post_ra>
